<compile_context>
chip_gen: v5e
topology: v5e:2x2
jax: 0.10.0
libtpu: 0.0.40
codegen_flags: <defaults>
</compile_context>

<pallas_src>
import functools
import math

import jax
import jax.numpy as jnp
from jax.experimental import pallas as pl
from jax.experimental.pallas import tpu as pltpu


def _pick_row_tile(total_rows, quantum, target_rows):
    """Largest divisor of total_rows that is a multiple of `quantum` and
    <= max(target_rows, quantum).  Falls back to the full extent (a full-size
    block is always a legal Pallas block)."""
    limit = max(target_rows, quantum)
    best = None
    for d in range(1, total_rows + 1):
        if d > limit:
            break
        if total_rows % d:
            continue
        if d % quantum == 0:
            best = d
    return best if best is not None else total_rows


def _deconv_fused_kernel(x_ref, w_ref, b_ref, o_ref, *, precision):
    # x_ref: [tm, Cin]          tm = th * W tokens, row-major over (h, w)
    # w_ref: [2, Cin, 2*Cout]   resident; axis0 = kh, columns ordered (kw, oc)
    # b_ref: [1, 2*Cout]
    # o_ref: [th, 1, W, 2*Cout] final layout: rows (h, kh), cols (w, kw, oc)
    kh = pl.program_id(1)
    acc = jnp.dot(x_ref[...], w_ref[kh],
                  preferred_element_type=jnp.float32, precision=precision)
    acc = acc + b_ref[...].astype(jnp.float32)
    # Split tokens (th*W) -> (th, 1, W).  W % 8 == 0 on this path, so the
    # reshape is a pure sublane-tile regrouping (no relayout).
    o_ref[...] = acc.reshape(o_ref.shape).astype(o_ref.dtype)


def _deconv_gemm_kernel(x_ref, w_ref, b_ref, o_ref, *, precision):
    # x_ref: [tm, Cin]; w_ref: [Cin, 4*Cout]; b_ref: [1, 4*Cout]; o_ref: [tm, 4*Cout]
    acc = jnp.dot(x_ref[...], w_ref[...],
                  preferred_element_type=jnp.float32, precision=precision)
    o_ref[...] = (acc + b_ref[...].astype(jnp.float32)).astype(o_ref.dtype)


def upsample_conv2d(x, weight, bias, *, target_rows=1024, precision=None):
    """x: [B, L, Cin]; weight: [Cin, Cout, 2, 2] (PyTorch ConvTranspose2d layout);
    bias: [Cout].  Returns [B, 4L, Cout] (same as UpsampleConv2d.forward)."""
    B, L, Cin = x.shape
    H = W = int(math.isqrt(L))
    assert H * W == L, "L must be a perfect square"
    Cout = weight.shape[1]
    M = B * L
    itemsize = x.dtype.itemsize

    if precision is None and x.dtype == jnp.float32:
        # f32 inputs: use exact f32 MXU passes so results match an f32 reference
        # (default MXU precision is reduced).  Pass Precision.DEFAULT or feed
        # bf16 inputs for the fast path.
        precision = jax.lax.Precision.HIGHEST

    cost = pl.CostEstimate(
        flops=2 * M * Cin * 4 * Cout,
        transcendentals=0,
        bytes_accessed=(M * Cin + 4 * Cin * Cout + 4 * Cout + M * 4 * Cout) * itemsize,
    )

    x_mat = x.reshape(M, Cin)  # token-major GEMM LHS

    # Conservative per-step buffer budget (double-buffered X/O tiles + resident
    # weights) that fits v5e's 16 MiB scoped-VMEM default and v7x's 64 MiB VMEM.
    budget = 8 * 1024 * 1024

    if W % 8 == 0:
        # ---- Fused-layout path: kernel writes the final PyTorch layout. ----
        N2 = 2 * Cout                     # (kw, oc)
        BH = B * H
        # [kh, ic, (kw, oc)]
        w_mat = jnp.transpose(weight, (2, 0, 3, 1)).reshape(2, Cin, N2)
        b_mat = jnp.tile(bias, 2).reshape(1, N2)

        w_bytes = 2 * (2 * Cin * N2) * itemsize           # weight buffers
        avail = max(budget - w_bytes, 2 * 1024 * 1024)
        per_row = 2 * itemsize * (Cin + N2)               # X + O rows, x2 buffers
        target_tm = max(8, min(target_rows, avail // per_row))
        th = _pick_row_tile(BH, 1, max(1, target_tm // W))
        tm = th * W                                       # multiple of 8 (W % 8 == 0)

        out = pl.pallas_call(
            functools.partial(_deconv_fused_kernel, precision=precision),
            out_shape=jax.ShapeDtypeStruct((BH, 2, W, N2), x.dtype),
            grid=(BH // th, 2),
            in_specs=[
                # X tile; block index is kh-independent so it is fetched once
                # per row-tile and reused for both kh steps.
                pl.BlockSpec((tm, Cin), lambda i, kh: (i, 0)),
                # Full weight, VMEM-resident across the whole grid.
                pl.BlockSpec((2, Cin, N2), lambda i, kh: (0, 0, 0)),
                # Bias, resident.
                pl.BlockSpec((1, N2), lambda i, kh: (0, 0)),
            ],
            out_specs=pl.BlockSpec((th, 1, W, N2), lambda i, kh: (i, kh, 0, 0)),
            compiler_params=pltpu.CompilerParams(
                dimension_semantics=("parallel", "arbitrary"),
            ),
            cost_estimate=cost,
        )(x_mat, w_mat, b_mat)

        # [BH, 2, W, 2, Cout] is already the PyTorch memory order -> free reshape.
        return out.reshape(B, 4 * L, Cout)

    # ---- Fallback (W % 8 != 0): tiled GEMM + XLA layout fixup. ----
    N4 = 4 * Cout                         # (kh, kw, oc)
    w_mat = jnp.transpose(weight, (0, 2, 3, 1)).reshape(Cin, N4)
    b_mat = jnp.tile(bias, 4).reshape(1, N4)

    w_bytes = 2 * (Cin * N4) * itemsize
    avail = max(budget - w_bytes, 2 * 1024 * 1024)
    per_row = 2 * itemsize * (Cin + N4)
    target_tm = max(8, min(target_rows, avail // per_row))
    tm = _pick_row_tile(M, 8, target_tm)

    out_mat = pl.pallas_call(
        functools.partial(_deconv_gemm_kernel, precision=precision),
        out_shape=jax.ShapeDtypeStruct((M, N4), x.dtype),
        grid=(M // tm,),
        in_specs=[
            pl.BlockSpec((tm, Cin), lambda i: (i, 0)),
            pl.BlockSpec((Cin, N4), lambda i: (0, 0)),   # resident
            pl.BlockSpec((1, N4), lambda i: (0, 0)),     # resident
        ],
        out_specs=pl.BlockSpec((tm, N4), lambda i: (i, 0)),
        compiler_params=pltpu.CompilerParams(dimension_semantics=("parallel",)),
        cost_estimate=cost,
    )(x_mat, w_mat, b_mat)

    out = out_mat.reshape(B, H, W, 2, 2, Cout)
    out = jnp.transpose(out, (0, 1, 3, 2, 4, 5)).reshape(B, 4 * L, Cout)
    return out


def _reference(x, weight, bias):
    """Pure-JAX reference of the exact PyTorch forward (sanity check)."""
    B, L, Cin = x.shape
    H = W = int(math.isqrt(L))
    Cout = weight.shape[1]
    xim = jnp.transpose(x, (0, 2, 1)).reshape(B, Cin, H, W)
    # ConvTranspose2d k=2, s=2 (no overlap):
    # out[b, oc, 2h+kh, 2w+kw] = sum_ic x[b, ic, h, w] * w[ic, oc, kh, kw] + bias[oc]
    o = jnp.einsum("bihw,iokl->bohkwl", xim, weight,
                   precision=jax.lax.Precision.HIGHEST)
    o = o.reshape(B, Cout, 2 * H, 2 * W) + bias[None, :, None, None]
    return jnp.transpose(o.reshape(B, Cout, 4 * L), (0, 2, 1))


if __name__ == "__main__":
    def make_case(key, B, HW, Cin, Cout):
        k1, k2, k3 = jax.random.split(key, 3)
        L = HW * HW
        x = jax.random.normal(k1, (B, L, Cin), dtype=jnp.float32)
        fan = Cin * 2 * 2
        bound = 1.0 / math.sqrt(fan)
        w = jax.random.uniform(k2, (Cin, Cout, 2, 2), jnp.float32, -bound, bound)
        b = jax.random.uniform(k3, (Cout,), jnp.float32, -bound, bound)
        return x, w, b

    run = jax.jit(upsample_conv2d)
    key = jax.random.PRNGKey(0)
    k_a, k_b = jax.random.split(key)

    # Case 1: W multiple of 8 -> fused-layout path (no post-kernel transpose).
    x, w, b = make_case(k_a, B=2, HW=8, Cin=16, Cout=32)
    out = jax.block_until_ready(run(x, w, b))
    ref = _reference(x, w, b)
    assert out.shape == (2, 4 * 64, 32), out.shape
    assert jnp.allclose(out, ref, atol=1e-5, rtol=1e-5), "fused path mismatch"

    # Case 2: tiny odd spatial (W=4) -> fallback tiled-GEMM path.
    x, w, b = make_case(k_b, B=2, HW=4, Cin=4, Cout=8)
    out = jax.block_until_ready(run(x, w, b))
    ref = _reference(x, w, b)
    assert out.shape == (2, 4 * 16, 8), out.shape
    assert jnp.allclose(out, ref, atol=1e-5, rtol=1e-5), "fallback path mismatch"

    print("KERNEL_OK")
</pallas_src>

<mosaic_0001>
module attributes {stable_mosaic.version = 11 : i64} {
  func.func @_deconv_fused_kernel(%arg0: i32, %arg1: i32, %arg2: memref<128x16xf32, #tpu.memory_space<vmem>>, %arg3: memref<2x16x64xf32, #tpu.memory_space<vmem>>, %arg4: memref<1x64xf32, #tpu.memory_space<vmem>>, %arg5: memref<16x1x8x64xf32, #tpu.memory_space<vmem>>) attributes {dimension_semantics = [#tpu.dimension_semantics<parallel>, #tpu.dimension_semantics<arbitrary>], iteration_bounds = array<i64: 1, 2>, scalar_prefetch = 0 : i64, scratch_operands = 0 : i64, tpu.core_type = #tpu.core_type<tc>, window_params = [{transform_indices = @transform_0, window_bounds = array<i64: 128, 16>}, {pipeline_mode = #tpu.pipeline_mode<synchronous>, transform_indices = @transform_1, window_bounds = array<i64: 2, 16, 64>}, {pipeline_mode = #tpu.pipeline_mode<synchronous>, transform_indices = @transform_2, window_bounds = array<i64: 1, 64>}, {transform_indices = @transform_3, window_bounds = array<i64: 16, 1, 8, 64>}]} {
    %c0 = arith.constant 0 : index
    %c0_0 = arith.constant 0 : index
    %0 = vector.load %arg2[%c0, %c0_0] : memref<128x16xf32, #tpu.memory_space<vmem>>, vector<128x16xf32>
    %1 = arith.index_cast %arg1 : i32 to index
    %c0_1 = arith.constant 0 : index
    %c0_2 = arith.constant 0 : index
    %2 = vector.load %arg3[%1, %c0_1, %c0_2] : memref<2x16x64xf32, #tpu.memory_space<vmem>>, vector<1x16x64xf32>
    %3 = vector.shape_cast %2 : vector<1x16x64xf32> to vector<16x64xf32>
    %cst = arith.constant dense<0.000000e+00> : vector<128x64xf32>
    %4 = tpu.matmul %0, %3, %cst {dimension_numbers = #tpu.dot_dimension_numbers<[1], [0], [0], [1], [0, 0, 1, 1], [], []>, precision = #tpu.contract_precision<fp32>} : vector<128x16xf32>, vector<16x64xf32>, vector<128x64xf32> -> vector<128x64xf32>
    %c0_3 = arith.constant 0 : index
    %c0_4 = arith.constant 0 : index
    %5 = vector.load %arg4[%c0_3, %c0_4] : memref<1x64xf32, #tpu.memory_space<vmem>>, vector<1x64xf32>
    %6 = vector.broadcast %5 : vector<1x64xf32> to vector<128x64xf32>
    %7 = arith.addf %4, %6 : vector<128x64xf32>
    %8 = vector.shape_cast %7 : vector<128x64xf32> to vector<16x1x8x64xf32>
    %c0_5 = arith.constant 0 : index
    %c0_6 = arith.constant 0 : index
    %c0_7 = arith.constant 0 : index
    %c0_8 = arith.constant 0 : index
    %9 = vector.load %arg5[%c0_5, %c0_6, %c0_7, %c0_8] : memref<16x1x8x64xf32, #tpu.memory_space<vmem>>, vector<16x1x8x64xf32>
    tpu.vector_store %arg5[%c0_5, %c0_6, %c0_7, %c0_8], %8 {strides = array<i32>} : memref<16x1x8x64xf32, #tpu.memory_space<vmem>>, vector<16x1x8x64xf32>,
    return
  }
  func.func @transform_0(%arg0: i32, %arg1: i32) -> (i32, i32) {
    %c0_i32 = arith.constant 0 : i32
    %c0_i32_0 = arith.constant 0 : i32
    return %arg0, %c0_i32 : i32, i32
  }
  func.func @transform_1(%arg0: i32, %arg1: i32) -> (i32, i32, i32) {
    %c0_i32 = arith.constant 0 : i32
    %c0_i32_0 = arith.constant 0 : i32
    %c0_i32_1 = arith.constant 0 : i32
    %c0_i32_2 = arith.constant 0 : i32
    return %c0_i32, %c0_i32_0, %c0_i32_1 : i32, i32, i32
  }
  func.func @transform_2(%arg0: i32, %arg1: i32) -> (i32, i32) {
    %c0_i32 = arith.constant 0 : i32
    %c0_i32_0 = arith.constant 0 : i32
    %c0_i32_1 = arith.constant 0 : i32
    return %c0_i32, %c0_i32_0 : i32, i32
  }
  func.func @transform_3(%arg0: i32, %arg1: i32) -> (i32, i32, i32, i32) {
    %c0_i32 = arith.constant 0 : i32
    %c0_i32_0 = arith.constant 0 : i32
    %c0_i32_1 = arith.constant 0 : i32
    return %arg0, %arg1, %c0_i32, %c0_i32_0 : i32, i32, i32, i32
  }
}

</mosaic_0001>

<bundles_post_ra>
// kernel: tile.9
= control target key start
LH: loop header
LB: loop body
LE: loop exit
PB: predicated region body
PF: predicated region fallthrough
CT: control target
= control target key end

     0   :  { %vm7_vm0 = vcmask 261120   ;;  %vm13_vm1 = vcmask 523520   ;;  %s39_s0 = inlined_call_operand.vmem [shape: f32[2,32], index: 0, kind: input, shape index: {}]   ;;  %s40_s1 = inlined_call_operand.vmem [shape: f32[1,64], index: 1, kind: output, shape index: {}]  }
   0x1   :  { %v4_v0 = vld [vmem:[%s39_s0] sm:$0x3]  ;;  %s22_s0 = smov 32  }
   0x2   :  { %5 = vst [vmem:[#allocation1] sm:$0x3] %v4_v0 }
   0x9   :  { %v10_v1 = vld [vmem:[#allocation1 + $0x1] sm:$0x1]   ;;  %v6_v2 = vld [vmem:[#allocation1] sm:$0x1]  }
   0xa   :  { %11 = vrot.lane.b32.xlu0 %v10_v1, %s22_s0  ;;  %8 = vst.msk [vmem:[#allocation0] sm:$0x1] %vm7_vm0, %v6_v2  }
  0x7c   :  { %v12_v3 = vpop.permute.xlu0 %11  }
  0x7d   :  { %14 = vst.msk [vmem:[#allocation0] sm:$0x1] %vm13_vm1, %v12_v3  }
  0x84   :  { %v17_v4 = vld [vmem:[#allocation0] sm:$0x1] }
  0x85   :  { %20 = vst [vmem:[%s40_s1] sm:$0x1] %v17_v4 }

// kernel: tile.8
= control target key start
LH: loop header
LB: loop body
LE: loop exit
PB: predicated region body
PF: predicated region fallthrough
CT: control target
= control target key end

     0   :  { %s22_s0 = inlined_call_operand.vmem [shape: f32[32], index: 0, kind: input, shape index: {}]   ;;  %s23_s1 = inlined_call_operand.vmem [shape: f32[2,32], index: 1, kind: output, shape index: {}]  }
   0x1   :  { %v4_v0 = vld [vmem:[%s22_s0] ss:$0 sm:$0xff] }
   0x2   :  { %5 = vst [vmem:[%s23_s1] sm:$0x3] %v4_v0 }

// kernel: upsample_conv2d.1
= control target key start
LH: loop header
LB: loop body
LE: loop exit
PB: predicated region body
PF: predicated region fallthrough
CT: control target
= control target key end

     0   :  { %s1183_s12 = smov 0   ;;  %s1185_s13 = smov 0   ;;  %s1682_s0 = inlined_call_operand.vmem [shape: f32[128,16], index: 0, kind: input, shape index: {}]   ;;  %s1683_s1 = inlined_call_operand.vmem [shape: f32[2,16,64], index: 1, kind: input, shape index: {}]   ;;  %s1684_s2 = inlined_call_operand.vmem [shape: f32[1,64], index: 2, kind: input, shape index: {}]   ;;  %s1685_s3 = inlined_call_operand.vmem [shape: f32[16,2,8,64], index: 3, kind: output, shape index: {}]  }
   0x1   :  { %s1187_s14 = smov 0   ;;  %s1189_s15 = smov 0  }
   0x2   :  { %s1191_s16 = smov 0  }
   0x3 LB: > { %s1067_s17 = sadd.s32 4294967295, %s1161_s16   ;;  %s22_s18 = sadd.s32 1, %s1157_s15  ;;  %s1161_s16 = sphi %s1191_s16, %s13_s16   ;;  %s1157_s15 = sphi %s1189_s15, %s1690_s15   ;;  %s1153_s14 = sphi %s1187_s14, %s1689_s14   ;;  %s1149_s13 = sphi %s1185_s13, %s1688_s13   ;;  %s1145_s12 = sphi %s1183_s12, %s1687_s12  }
   0x4   : > { %p23_p0 = scmp.ge.s32.totalorder %s22_s18, 2  ;;  %s102_s19 = sadd.s32 1, %s1149_s13 }
   0x5   : > { %p112_p1 = scmp.ne.s32.totalorder %s1149_s13, %s1145_s12  ;;  %p113_p2 = scmp.eq.s32.totalorder %s1067_s17, 1 }
   0x6   : > { %s1692_s18 = smov (%p23_p0, %s22_s18), 0  ;;  %p1071_p4 = scmp.ge.s32.totalorder %s1161_s16, 1 }
   0x7   : > { %p1215_p3 = por %p113_p2, %p112_p1  ;;  %s98_s21 = ssub.s32 %s1157_s15, %s1692_s18 }
   0x8   : > { %p152_p5 = scmp.lt.s32.totalorder %s1161_s16, 3  ;;  %p100_p6 = scmp.eq.s32.totalorder %s98_s21, 0 }
   0xa   : > { %p153_p7 = pnand %p1071_p4, %p152_p5 }
   0xb   : > { %s1224_s22 = scalar_select %p100_p6, %s1149_s13, %s102_s19  }
   0xc   : > { %156 = sbr.rel (%p153_p7) target bundleno = 364 (0x16c), region = 32  ;;  %s1073_s23 = sshll.u32 (!%p153_p7), %s1153_s14, 4 }
   0xd   : > { %s199_s5 = scalar_lea.vmem (!%p153_p7), %s1683_s1, %s1073_s23  ;;  %s172_s23 = sand.u32 (!%p153_p7), 1, %s1145_s12  }
   0xe   : > { %s1072_s24 = sshll.u32 (!%p153_p7), %s172_s23, 7 }
   0xf   : > { %s1585_s25 = scalar_lea.vmem (!%p153_p7), [#allocation2], %s1072_s24 }
  0x11   : > { %v190_v0 = vld [vmem:[%s1682_s0 + $0x40] sm:$0xff]  ;;  %vm206_vm0 = vcmask 130048   ;;  %v191_v1 = vld [vmem:[%s1682_s0 + $0x48] sm:$0xff]  ;;  %v192_v6 = vld [vmem:[%s1682_s0 + $0x50] sm:$0xff]  ;;  %vm879_vm1 = vcmask 523264   ;;  %s1075_s12 = sshll.u32 (%p1215_p3), %s1153_s14, 3 }
  0x12   : > { %v182_v2 = vld [vmem:[%s1682_s0] sm:$0xff]  ;;  %v232_v3 = vsel %vm206_vm0, %v190_v0, 0  ;;  %v235_v4 = vsel %vm206_vm0, %v191_v1, 0  ;;  %v183_v7 = vld [vmem:[%s1682_s0 + $0x8] sm:$0xff]  ;;  %v238_v15 = vsel %vm206_vm0, %v192_v6, 0  ;;  %v193_v35 = vld [vmem:[%s1682_s0 + $0x58] sm:$0xff]  ;;  %s907_s28 = scalar_lea.vmem (%p1215_p3), %s1685_s3, %s1075_s12 }
  0x13   : > { %v208_v5 = vsel %vm206_vm0, %v182_v2, 0  ;;  %v201_v8 = vld [vmem:[%s199_s5 + $0x8] sm:$0xff]  ;;  %v200_v9 = vld [vmem:[%s199_s5] sm:$0xff]  ;;  %v1248_v10 = vand.u32 4294901760, %v232_v3  ;;  %v1250_v11 = vand.u32 4294901760, %v235_v4  ;;  %v211_v16 = vsel %vm206_vm0, %v183_v7, 0 }
  0x14   : > { %v1252_v12 = vand.u32 4294901760, %v208_v5  ;;  %v269_v13 = vand.u32 4294901760, %v201_v8  ;;  %v1254_v14 = vand.u32 4294901760, %v200_v9  ;;  %v1267_v20 = vand.u32 4294901760, %v211_v16  ;;  %v184_v36 = vld [vmem:[%s1682_s0 + $0x10] sm:$0xff]  ;;  %v185_v39 = vld [vmem:[%s1682_s0 + $0x18] sm:$0xff] }
  0x15   : > { %v1259_v17 = vsub.f32 %v232_v3, %v1248_v10  ;;  %v1262_v18 = vsub.f32 %v235_v4, %v1250_v11  ;;  %v1277_v28 = vand.u32 4294901760, %v238_v15  ;;  %v241_v45 = vsel %vm206_vm0, %v193_v35, 0  ;;  %v194_v56 = vld [vmem:[%s1682_s0 + $0x60] sm:$0xff]  ;;  %v195_v6 = vld [vmem:[%s1682_s0 + $0x68] sm:$0xff] }
  0x16   : > { %v1265_v19 = vsub.f32 %v208_v5, %v1252_v12  ;;  %1078 = vmatpush.msra.mxu2 %v269_v13  ;;  %v417_v21 = vsub.f32 %v201_v8, %v269_v13  ;;  %v423_v22 = vsub.f32 %v200_v9, %v1254_v14  ;;  %270 = vmatpush.msra.mxu0 %v269_v13  ;;  %v214_v46 = vsel %vm206_vm0, %v184_v36, 0  ;;  %v186_v57 = vld [vmem:[%s1682_s0 + $0x20] sm:$0xff]  ;;  %v187_v7 = vld [vmem:[%s1682_s0 + $0x28] sm:$0xff] }
  0x17   : > { %v339_v23 = vand.u32 4294901760, %v1259_v17  ;;  %v1273_v25 = vsub.f32 %v211_v16, %v1267_v20  ;;  %v347_v30 = vand.u32 4294901760, %v1262_v18  ;;  %v1297_v42 = vsub.f32 %v238_v15, %v1277_v28 }
  0x18   : > { %v275_v24 = vand.u32 4294901760, %v1265_v19  ;;  %1079 = vmatpush.msra.mxu2 %v1254_v14  ;;  %v418_v26 = vand.u32 4294901760, %v417_v21  ;;  %v424_v27 = vand.u32 4294901760, %v423_v22  ;;  %272 = vmatpush.msra.mxu0 %v1254_v14  ;;  %v1307_v47 = vand.u32 4294901760, %v214_v46 }
  0x19   : > { %v340_v29 = vsub.f32 %v1259_v17, %v339_v23  ;;  %v283_v32 = vand.u32 4294901760, %v1273_v25  ;;  %v348_v43 = vsub.f32 %v1262_v18, %v347_v30  ;;  %v217_v48 = vsel %vm206_vm0, %v185_v39, 0 }
  0x1a   : > { %509 = vmatpush.msrb.mxu2 %v417_v21  ;;  %v276_v31 = vsub.f32 %v1265_v19, %v275_v24  ;;  %v419_v33 = vsub.f32 %v417_v21, %v418_v26  ;;  %v425_v34 = vsub.f32 %v423_v22, %v424_v27  ;;  %726 = vmatpush.msrb.mxu0 %v418_v26  ;;  %v355_v49 = vand.u32 4294901760, %v1297_v42 }
  0x1b   : > { %v341_v37 = vand.u32 4294901760, %v340_v29  ;;  %v284_v44 = vsub.f32 %v1273_v25, %v283_v32  ;;  %v1311_v50 = vand.u32 4294901760, %v241_v45  ;;  %v1314_v51 = vsub.f32 %v214_v46, %v1307_v47 }
  0x1c   : > { %v277_v38 = vand.u32 4294901760, %v276_v31  ;;  %512 = vmatpush.msrb.mxu2 %v423_v22  ;;  %v420_v40 = vand.u32 4294901760, %v419_v33  ;;  %v426_v41 = vand.u32 4294901760, %v425_v34  ;;  %730 = vmatpush.msrb.mxu0 %v424_v27  ;;  %v349_v52 = vand.u32 4294901760, %v348_v43  ;;  %v196_v33 = vld [vmem:[%s1682_s0 + $0x70] sm:$0xff] }
  0x1d   : > { %342 = vmatmul.f32.vlgmr.msra.gmra.mxu2 %v341_v37  ;;  %v285_v53 = vand.u32 4294901760, %v284_v44  ;;  %v1318_v54 = vand.u32 4294901760, %v217_v48  ;;  %v291_v55 = vand.u32 4294901760, %v1314_v51  ;;  %v356_v58 = vsub.f32 %v1297_v42, %v355_v49  ;;  %v188_v34 = vld [vmem:[%s1682_s0 + $0x30] sm:$0xff] }
  0x1e   : > { %278 = vmatmul.f32.vlgmr.msra.gmra.mxu0 %v277_v38  ;;  %1080 = vmatpush.msra.mxu3 %v420_v40  ;;  %v1331_v59 = vsub.f32 %v241_v45, %v1311_v50  ;;  %v244_v62 = vsel %vm206_vm0, %v194_v56, 0  ;;  %v220_v63 = vsel %vm206_vm0, %v186_v57, 0  ;;  %v223_v16 = vsel %vm206_vm0, %v187_v7, 0 }
  0x1f   : > { %421 = vmatpush.msra.mxu1 %v420_v40  ;;  %v292_v60 = vsub.f32 %v1314_v51, %v291_v55  ;;  %v1339_v61 = vsub.f32 %v217_v48, %v1318_v54  ;;  %v357_v0 = vand.u32 4294901760, %v356_v58  ;;  %v1346_v3 = vand.u32 4294901760, %v244_v62 }
  0x20   : > { %1081 = vmatpush.msra.mxu3 %v426_v41  ;;  %v363_v1 = vand.u32 4294901760, %v1331_v59  ;;  %v1349_v5 = vand.u32 4294901760, %v220_v63  ;;  %v1377_v31 = vand.u32 4294901760, %v223_v16  ;;  %v250_v38 = vsel %vm206_vm0, %v196_v33, 0 }
  0x21   : > { %427 = vmatpush.msra.mxu1 %v426_v41  ;;  %461 = vmatmul.f32.vlgmr.msra.gmra.mxu3 %v1248_v10  ;;  %v293_v2 = vand.u32 4294901760, %v292_v60  ;;  %v299_v4 = vand.u32 4294901760, %v1339_v61  ;;  %v1361_v9 = vsub.f32 %v244_v62, %v1346_v3  ;;  %v226_v40 = vsel %vm206_vm0, %v188_v34, 0 }
  0x22   : > { %429 = vmatmul.f32.vlgmr.msra.gmra.mxu1 %v1252_v12  ;;  %609 = vmatpush.msrb.mxu3 %v269_v13  ;;  %v364_v8 = vsub.f32 %v1331_v59, %v363_v1  ;;  %v1368_v15 = vsub.f32 %v220_v63, %v1349_v5  ;;  %v1396_v39 = vsub.f32 %v223_v16, %v1377_v31  ;;  %v1400_v43 = vand.u32 4294901760, %v250_v38 }
  0x23   : > { %811 = vmatpush.msrb.mxu1 %v269_v13  ;;  %v300_v13 = vsub.f32 %v1339_v61, %v299_v4  ;;  %v371_v26 = vand.u32 4294901760, %v1361_v9  ;;  %v1405_v48 = vand.u32 4294901760, %v226_v40 }
  0x24   : > { %611 = vmatpush.msrb.mxu3 %v1254_v14  ;;  %v365_v21 = vand.u32 4294901760, %v364_v8  ;;  %v307_v29 = vand.u32 4294901760, %v1368_v15  ;;  %v315_v46 = vand.u32 4294901760, %v1396_v39  ;;  %v1417_v57 = vsub.f32 %v250_v38, %v1400_v43 }
  0x25   : > { %813 = vmatpush.msrb.mxu1 %v1254_v14  ;;  %350 = vmatmul.f32.gmra.mxu2 %v349_v52  ;;  %v247_v14 = vsel %vm206_vm0, %v195_v6, 0  ;;  %v301_v27 = vand.u32 4294901760, %v300_v13  ;;  %v372_v36 = vsub.f32 %v1361_v9, %v371_v26  ;;  %v197_v52 = vld [vmem:[%s1682_s0 + $0x78] sm:$0xff]  ;;  %v322_v60 = vsub.f32 %v226_v40, %v1405_v48 }
  0x26   : > { %286 = vmatmul.f32.gmra.mxu0 %v285_v53  ;;  %v1371_v22 = vand.u32 4294901760, %v247_v14  ;;  %v308_v37 = vsub.f32 %v1368_v15, %v307_v29  ;;  %v189_v53 = vld [vmem:[%s1682_s0 + $0x38] sm:$0xff]  ;;  %v316_v58 = vsub.f32 %v1396_v39, %v315_v46  ;;  %v253_v62 = vsel %vm206_vm0, %v197_v52, 0 }
  0x27   : > { %v373_v44 = vand.u32 4294901760, %v372_v36  ;;  %v229_v63 = vsel %vm206_vm0, %v189_v53, 0  ;;  %v1428_v7 = vand.u32 4294901760, %v253_v62  ;;  %v323_v8 = vand.u32 4294901760, %v322_v60 }
  0x28   : > { %v1386_v35 = vsub.f32 %v247_v14, %v1371_v22  ;;  %v309_v45 = vand.u32 4294901760, %v308_v37  ;;  %v317_v6 = vand.u32 4294901760, %v316_v58  ;;  %v329_v13 = vand.u32 4294901760, %v229_v63 }
  0x29   : > { %465 = vmatmul.f32.gmra.mxu3 %v1250_v11  ;;  %v1434_v16 = vsub.f32 %v253_v62, %v1428_v7 }
  0x2a   : > { %433 = vmatmul.f32.gmra.mxu1 %v1267_v20  ;;  %v379_v41 = vand.u32 4294901760, %v1386_v35 }
  0x2b   : > { %v395_v34 = vand.u32 4294901760, %v1434_v16 }
  0x2c   : > { %v380_v56 = vsub.f32 %v1386_v35, %v379_v41 }
  0x2d   : > { %358 = vmatmul.f32.gmra.mxu2 %v357_v0  ;;  %v396_v38 = vsub.f32 %v1434_v16, %v395_v34 }
  0x2e   : > { %294 = vmatmul.f32.gmra.mxu0 %v293_v2  ;;  %v381_v0 = vand.u32 4294901760, %v380_v56  ;;  %v387_v2 = vand.u32 4294901760, %v1417_v57 }
  0x30   : > { %v388_v14 = vsub.f32 %v1417_v57, %v387_v2 }
  0x31   : > { %469 = vmatmul.f32.gmra.mxu3 %v1277_v28 }
  0x32   : > { %437 = vmatmul.f32.gmra.mxu1 %v1307_v47  ;;  %v389_v33 = vand.u32 4294901760, %v388_v14 }
  0x35   : > { %366 = vmatmul.f32.gmra.mxu2 %v365_v21  ;;  %v324_v21 = vsub.f32 %v322_v60, %v323_v8 }
  0x36   : > { %302 = vmatmul.f32.gmra.mxu0 %v301_v27  ;;  %v330_v27 = vsub.f32 %v229_v63, %v329_v13 }
  0x37   : > { %v325_v36 = vand.u32 4294901760, %v324_v21 }
  0x38   : > { %v331_v37 = vand.u32 4294901760, %v330_v27 }
  0x39   : > { %473 = vmatmul.f32.gmra.mxu3 %v1311_v50 }
  0x3a   : > { %441 = vmatmul.f32.gmra.mxu1 %v1318_v54  ;;  %v332_v40 = vsub.f32 %v330_v27, %v331_v37 }
  0x3d   : > { %374 = vmatmul.f32.gmra.mxu2 %v373_v44  ;;  %v397_v44 = vand.u32 4294901760, %v396_v38 }
  0x3e   : > { %310 = vmatmul.f32.gmra.mxu0 %v309_v45  ;;  %v333_v45 = vand.u32 4294901760, %v332_v40 }
  0x41   : > { %477 = vmatmul.f32.gmra.mxu3 %v1346_v3 }
  0x42   : > { %445 = vmatmul.f32.gmra.mxu1 %v1349_v5 }
  0x45   : > { %382 = vmatmul.f32.gmra.mxu2 %v381_v0 }
  0x46   : > { %318 = vmatmul.f32.gmra.mxu0 %v317_v6 }
  0x49   : > { %481 = vmatmul.f32.gmra.mxu3 %v1371_v22 }
  0x4a   : > { %449 = vmatmul.f32.gmra.mxu1 %v1377_v31 }
  0x4d   : > { %390 = vmatmul.f32.gmra.mxu2 %v389_v33 }
  0x4e   : > { %326 = vmatmul.f32.gmra.mxu0 %v325_v36 }
  0x51   : > { %485 = vmatmul.f32.gmra.mxu3 %v1400_v43 }
  0x52   : > { %453 = vmatmul.f32.gmra.mxu1 %v1405_v48 }
  0x55   : > { %398 = vmatmul.f32.gmra.mxu2 %v397_v44 }
  0x56   : > { %334 = vmatmul.f32.gmra.mxu0 %v333_v45 }
  0x59   : > { %489 = vmatmul.f32.gmra.mxu3 %v1428_v7 }
  0x5a   : > { %457 = vmatmul.f32.gmra.mxu1 %v329_v13 }
  0x5d   : > { %515 = vmatmul.f32.vlgmr.msrb.gmra.mxu2 %v1265_v19  ;;  %v1483_v19 = vld [vmem:[%s1684_s2] ss:$0 sm:$0xff] }
  0x5e   : > { %732 = vmatmul.f32.vlgmr.msrb.gmra.mxu0 %v1252_v12 }
  0x61   : > { %615 = vmatmul.f32.vlgmr.msrb.gmra.mxu3 %v275_v24 }
  0x62   : > { %815 = vmatmul.f32.vlgmr.msrb.gmra.mxu1 %v1252_v12 }
  0x65   : > { %520 = vmatmul.f32.gmra.mxu2 %v1273_v25 }
  0x66   : > { %736 = vmatmul.f32.gmra.mxu0 %v1267_v20 }
  0x69   : > { %621 = vmatmul.f32.gmra.mxu3 %v283_v32 }
  0x6a   : > { %819 = vmatmul.f32.gmra.mxu1 %v1267_v20 }
  0x6d   : > { %525 = vmatmul.f32.gmra.mxu2 %v1314_v51 }
  0x6e   : > { %740 = vmatmul.f32.gmra.mxu0 %v1307_v47 }
  0x71   : > { %627 = vmatmul.f32.gmra.mxu3 %v291_v55 }
  0x72   : > { %823 = vmatmul.f32.gmra.mxu1 %v1307_v47 }
  0x75   : > { %530 = vmatmul.f32.gmra.mxu2 %v1339_v61 }
  0x76   : > { %744 = vmatmul.f32.gmra.mxu0 %v1318_v54 }
  0x79   : > { %633 = vmatmul.f32.gmra.mxu3 %v299_v4 }
  0x7a   : > { %827 = vmatmul.f32.gmra.mxu1 %v1318_v54 }
  0x7d   : > { %535 = vmatmul.f32.gmra.mxu2 %v1368_v15 }
  0x7e   : > { %748 = vmatmul.f32.gmra.mxu0 %v1349_v5 }
  0x81   : > { %639 = vmatmul.f32.gmra.mxu3 %v307_v29 }
  0x82   : > { %831 = vmatmul.f32.gmra.mxu1 %v1349_v5 }
  0x85   : > { %540 = vmatmul.f32.gmra.mxu2 %v1396_v39 }
  0x86   : > { %752 = vmatmul.f32.gmra.mxu0 %v1377_v31 }
  0x89   : > { %645 = vmatmul.f32.gmra.mxu3 %v315_v46 }
  0x8a   : > { %835 = vmatmul.f32.gmra.mxu1 %v1377_v31 }
  0x8d   : > { %545 = vmatmul.f32.gmra.mxu2 %v322_v60 }
  0x8e   : > { %756 = vmatmul.f32.gmra.mxu0 %v1405_v48 }
  0x91   : > { %651 = vmatmul.f32.gmra.mxu3 %v323_v8 }
  0x92   : > { %839 = vmatmul.f32.gmra.mxu1 %v1405_v48 }
  0x95   : > { %550 = vmatmul.f32.gmra.mxu2 %v330_v27 }
  0x96   : > { %760 = vmatmul.f32.gmra.mxu0 %v329_v13 }
  0x99   : > { %657 = vmatmul.f32.gmra.mxu3 %v331_v37 }
  0x9a   : > { %843 = vmatmul.f32.gmra.mxu1 %v329_v13 }
  0x9b   : > { %v1477_v12 = vpop.f32.mrf.mxu0 }
  0x9d   : > { %555 = vmatmul.f32.gmra.mxu2 %v1259_v17 }
  0x9e   : > { %764 = vmatmul.f32.gmra.mxu0 %v1248_v10 }
  0x9f   : > { %v1486_v20 = vpop.f32.mrf.mxu1 }
  0xa0   : > { %v343_v24 = vpop.f32.mrf.mxu2 }
  0xa1   : > { %v344_v25 = vadd.f32 %v1483_v19, %v343_v24  ;;  %663 = vmatmul.f32.gmra.mxu3 %v339_v23 }
  0xa2   : > { %847 = vmatmul.f32.gmra.mxu1 %v1248_v10 }
  0xa3   : > { %v1492_v32 = vpop.f32.mrf.mxu0 }
  0xa4   : > { %v462_v47 = vpop.f32.mrf.mxu3 }
  0xa5   : > { %v1494_v51 = vadd.f32 %v462_v47, %v344_v25  ;;  %560 = vmatmul.f32.gmra.mxu2 %v1262_v18 }
  0xa6   : > { %768 = vmatmul.f32.gmra.mxu0 %v1250_v11 }
  0xa7   : > { %v1498_v54 = vpop.f32.mrf.mxu1 }
  0xa8   : > { %v351_v55 = vpop.f32.mrf.mxu2 }
  0xa9   : > { %v352_v61 = vadd.f32 %v1483_v19, %v351_v55  ;;  %669 = vmatmul.f32.gmra.mxu3 %v347_v30 }
  0xaa   : > { %851 = vmatmul.f32.gmra.mxu1 %v1250_v11 }
  0xab   : > { %v1504_v10 = vpop.f32.mrf.mxu0 }
  0xac   : > { %v466_v17 = vpop.f32.mrf.mxu3  ;;  %v296_v25 = vadd.f32 %v1483_v19, %v1504_v10 }
  0xad   : > { %v1506_v23 = vadd.f32 %v466_v17, %v352_v61  ;;  %565 = vmatmul.f32.gmra.mxu2 %v1297_v42 }
  0xae   : > { %772 = vmatmul.f32.gmra.mxu0 %v1277_v28 }
  0xaf   : > { %v1510_v4 = vpop.f32.mrf.mxu1 }
  0xb0   : > { %v359_v5 = vpop.f32.mrf.mxu2 }
  0xb1   : > { %v360_v15 = vadd.f32 %v1483_v19, %v359_v5  ;;  %675 = vmatmul.f32.gmra.mxu3 %v355_v49 }
  0xb2   : > { %855 = vmatmul.f32.gmra.mxu1 %v1277_v28 }
  0xb3   : > { %v1516_v11 = vpop.f32.mrf.mxu0 }
  0xb4   : > { %v470_v18 = vpop.f32.mrf.mxu3 }
  0xb5   : > { %v1518_v30 = vadd.f32 %v470_v18, %v360_v15  ;;  %570 = vmatmul.f32.gmra.mxu2 %v1331_v59 }
  0xb6   : > { %776 = vmatmul.f32.gmra.mxu0 %v1311_v50 }
  0xb7   : > { %v1522_v29 = vpop.f32.mrf.mxu1 }
  0xb8   : > { %v367_v31 = vpop.f32.mrf.mxu2 }
  0xb9   : > { %v368_v39 = vadd.f32 %v1483_v19, %v367_v31  ;;  %681 = vmatmul.f32.gmra.mxu3 %v363_v1  ;;  %v304_v31 = vadd.f32 %v1483_v19, %v1516_v11 }
  0xba   : > { %859 = vmatmul.f32.gmra.mxu1 %v1311_v50 }
  0xbb   : > { %v1528_v28 = vpop.f32.mrf.mxu0 }
  0xbc   : > { %v474_v42 = vpop.f32.mrf.mxu3 }
  0xbd   : > { %v1530_v49 = vadd.f32 %v474_v42, %v368_v39  ;;  %575 = vmatmul.f32.gmra.mxu2 %v1361_v9 }
  0xbe   : > { %780 = vmatmul.f32.gmra.mxu0 %v1346_v3 }
  0xbf   : > { %v1534_v46 = vpop.f32.mrf.mxu1 }
  0xc0   : > { %v375_v48 = vpop.f32.mrf.mxu2 }
  0xc1   : > { %v376_v52 = vadd.f32 %v1483_v19, %v375_v48  ;;  %687 = vmatmul.f32.gmra.mxu3 %v371_v26 }
  0xc2   : > { %863 = vmatmul.f32.gmra.mxu1 %v1346_v3 }
  0xc3   : > { %v1540_v50 = vpop.f32.mrf.mxu0 }
  0xc4   : > { %v478_v59 = vpop.f32.mrf.mxu3 }
  0xc5   : > { %v1542_v1 = vadd.f32 %v478_v59, %v376_v52  ;;  %580 = vmatmul.f32.gmra.mxu2 %v1386_v35  ;;  %v443_v52 = vadd.f32 %v1522_v29, %v304_v31 }
  0xc6   : > { %784 = vmatmul.f32.gmra.mxu0 %v1371_v22 }
  0xc7   : > { %v1546_v53 = vpop.f32.mrf.mxu1 }
  0xc8   : > { %v383_v56 = vpop.f32.mrf.mxu2 }
  0xc9   : > { %v384_v58 = vadd.f32 %v1483_v19, %v383_v56  ;;  %693 = vmatmul.f32.gmra.mxu3 %v379_v41 }
  0xca   : > { %867 = vmatmul.f32.gmra.mxu1 %v1371_v22 }
  0xcb   : > { %v1552_v3 = vpop.f32.mrf.mxu0 }
  0xcc   : > { %v482_v9 = vpop.f32.mrf.mxu3 }
  0xcd   : > { %v1554_v26 = vadd.f32 %v482_v9, %v384_v58  ;;  %585 = vmatmul.f32.gmra.mxu2 %v1417_v57  ;;  %v312_v9 = vadd.f32 %v1483_v19, %v1528_v28 }
  0xce   : > { %788 = vmatmul.f32.gmra.mxu0 %v1400_v43 }
  0xcf   : > { %v1558_v60 = vpop.f32.mrf.mxu1 }
  0xd0   : > { %v391_v62 = vpop.f32.mrf.mxu2 }
  0xd1   : > { %v392_v63 = vadd.f32 %v1483_v19, %v391_v62  ;;  %699 = vmatmul.f32.gmra.mxu3 %v387_v2  ;;  %v280_v2 = vadd.f32 %v1483_v19, %v1477_v12 }
  0xd2   : > { %871 = vmatmul.f32.gmra.mxu1 %v1400_v43 }
  0xd3   : > { %v1564_v22 = vpop.f32.mrf.mxu0  ;;  %v431_v27 = vadd.f32 %v1486_v20, %v280_v2  ;;  %v320_v2 = vadd.f32 %v1483_v19, %v1540_v50 }
  0xd4   : > { %v486_v35 = vpop.f32.mrf.mxu3 }
  0xd5   : > { %v1566_v41 = vadd.f32 %v486_v35, %v392_v63  ;;  %590 = vmatmul.f32.gmra.mxu2 %v1434_v16  ;;  %v288_v16 = vadd.f32 %v1483_v19, %v1492_v32 }
  0xd6   : > { %792 = vmatmul.f32.gmra.mxu0 %v1428_v7 }
  0xd7   : > { %v1570_v0 = vpop.f32.mrf.mxu1  ;;  %v435_v44 = vadd.f32 %v1498_v54, %v288_v16  ;;  %v439_v54 = vadd.f32 %v1510_v4, %v296_v25 }
  0xd8   : > { %v399_v6 = vpop.f32.mrf.mxu2 }
  0xd9   : > { %v400_v8 = vadd.f32 %v1483_v19, %v399_v6  ;;  %705 = vmatmul.f32.gmra.mxu3 %v395_v34  ;;  %v447_v6 = vadd.f32 %v1534_v46, %v312_v9 }
  0xda   : > { %875 = vmatmul.f32.gmra.mxu1 %v1428_v7 }
  0xdb   : > { %v733_v43 = vpop.f32.mrf.mxu0 }
  0xdc   : > { %v490_v57 = vpop.f32.mrf.mxu3 }
  0xdd   : > { %v1578_v13 = vadd.f32 %v490_v57, %v400_v8 }
  0xdf   : > { %v816_v14 = vpop.f32.mrf.mxu1 }
  0xe0   : > { %v516_v21 = vpop.f32.mrf.mxu2 }
  0xe1   : > { %v517_v36 = vadd.f32 %v516_v21, %v431_v27 }
  0xe3   : > { %v737_v33 = vpop.f32.mrf.mxu0 }
  0xe4   : > { %v616_v37 = vpop.f32.mrf.mxu3 }
  0xe5   : > { %v617_v34 = vadd.f32 %v616_v37, %v517_v36 }
  0xe7   : > { %v820_v7 = vpop.f32.mrf.mxu1  ;;  %v734_v38 = vadd.f32 %v733_v43, %v617_v34  ;;  %v328_v34 = vadd.f32 %v1483_v19, %v1552_v3 }
  0xe8   : > { %v521_v40 = vpop.f32.mrf.mxu2 }
  0xe9   : > { %v817_v45 = vadd.f32 %v816_v14, %v734_v38  ;;  %v522_v24 = vadd.f32 %v521_v40, %v435_v44  ;;  %v455_v44 = vadd.f32 %v1558_v60, %v328_v34 }
  0xeb   : > { %v741_v12 = vpop.f32.mrf.mxu0  ;;  %880 = vst.msk [vmem:[%s1585_s25] sm:$0xff] %vm879_vm1, %v817_v45 }
  0xec   : > { %v622_v20 = vpop.f32.mrf.mxu3 }
  0xed   : > { %v623_v32 = vadd.f32 %v622_v20, %v522_v24  ;;  %v336_v20 = vadd.f32 %v1483_v19, %v1564_v22 }
  0xef   : > { %v824_v47 = vpop.f32.mrf.mxu1  ;;  %v738_v55 = vadd.f32 %v737_v33, %v623_v32  ;;  %v451_v33 = vadd.f32 %v1546_v53, %v320_v2 }
  0xf0   : > { %v526_v61 = vpop.f32.mrf.mxu2 }
  0xf1   : > { %v821_v17 = vadd.f32 %v820_v7, %v738_v55  ;;  %v527_v15 = vadd.f32 %v526_v61, %v439_v54  ;;  %v459_v55 = vadd.f32 %v1570_v0, %v336_v20 }
  0xf3   : > { %v745_v5 = vpop.f32.mrf.mxu0  ;;  %881 = vst.msk [vmem:[%s1585_s25 + $0x8] sm:$0xff] %vm879_vm1, %v821_v17 }
  0xf4   : > { %v628_v18 = vpop.f32.mrf.mxu3 }
  0xf5   : > { %v629_v39 = vadd.f32 %v628_v18, %v527_v15 }
  0xf7   : > { %v828_v42 = vpop.f32.mrf.mxu1  ;;  %v742_v48 = vadd.f32 %v741_v12, %v629_v39 }
  0xf8   : > { %v531_v10 = vpop.f32.mrf.mxu2 }
  0xf9   : > { %v825_v59 = vadd.f32 %v824_v47, %v742_v48  ;;  %v532_v58 = vadd.f32 %v531_v10, %v443_v52 }
  0xfb   : > { %v749_v56 = vpop.f32.mrf.mxu0  ;;  %882 = vst.msk [vmem:[%s1585_s25 + $0x10] sm:$0xff] %vm879_vm1, %v825_v59 }
  0xfc   : > { %v634_v4 = vpop.f32.mrf.mxu3 }
  0xfd   : > { %v635_v62 = vadd.f32 %v634_v4, %v532_v58 }
  0xff   : > { %v832_v63 = vpop.f32.mrf.mxu1  ;;  %v746_v35 = vadd.f32 %v745_v5, %v635_v62 }
 0x100   : > { %v536_v11 = vpop.f32.mrf.mxu2 }
 0x101   : > { %v829_v8 = vadd.f32 %v828_v42, %v746_v35  ;;  %v537_v57 = vadd.f32 %v536_v11, %v447_v6 }
 0x103   : > { %v753_v43 = vpop.f32.mrf.mxu0  ;;  %883 = vst.msk [vmem:[%s1585_s25 + $0x18] sm:$0xff] %vm879_vm1, %v829_v8 }
 0x104   : > { %v640_v29 = vpop.f32.mrf.mxu3 }
 0x105   : > { %v641_v14 = vadd.f32 %v640_v29, %v537_v57 }
 0x107   : > { %v836_v21 = vpop.f32.mrf.mxu1  ;;  %v750_v27 = vadd.f32 %v749_v56, %v641_v14 }
 0x108   : > { %v541_v28 = vpop.f32.mrf.mxu2 }
 0x109   : > { %v833_v36 = vadd.f32 %v832_v63, %v750_v27  ;;  %v542_v16 = vadd.f32 %v541_v28, %v451_v33 }
 0x10b   : > { %v757_v37 = vpop.f32.mrf.mxu0  ;;  %884 = vst.msk [vmem:[%s1585_s25 + $0x20] sm:$0xff] %vm879_vm1, %v833_v36 }
 0x10c   : > { %v646_v46 = vpop.f32.mrf.mxu3 }
 0x10d   : > { %v647_v7 = vadd.f32 %v646_v46, %v542_v16 }
 0x10f   : > { %v840_v38 = vpop.f32.mrf.mxu1  ;;  %v754_v40 = vadd.f32 %v753_v43, %v647_v7 }
 0x110   : > { %v546_v50 = vpop.f32.mrf.mxu2 }
 0x111   : > { %v837_v45 = vadd.f32 %v836_v21, %v754_v40  ;;  %v547_v24 = vadd.f32 %v546_v50, %v455_v44 }
 0x113   : > { %v761_v12 = vpop.f32.mrf.mxu0  ;;  %885 = vst.msk [vmem:[%s1585_s25 + $0x28] sm:$0xff] %vm879_vm1, %v837_v45 }
 0x114   : > { %v652_v53 = vpop.f32.mrf.mxu3 }
 0x115   : > { %v653_v25 = vadd.f32 %v652_v53, %v547_v24 }
 0x117   : > { %v844_v32 = vpop.f32.mrf.mxu1  ;;  %v758_v3 = vadd.f32 %v757_v37, %v653_v25 }
 0x118   : > { %v551_v47 = vpop.f32.mrf.mxu2 }
 0x119   : > { %v841_v61 = vadd.f32 %v840_v38, %v758_v3  ;;  %v552_v17 = vadd.f32 %v551_v47, %v459_v55 }
 0x11b   : > { %v765_v54 = vpop.f32.mrf.mxu0  ;;  %886 = vst.msk [vmem:[%s1585_s25 + $0x30] sm:$0xff] %vm879_vm1, %v841_v61 }
 0x11c   : > { %v658_v60 = vpop.f32.mrf.mxu3 }
 0x11d   : > { %v659_v5 = vadd.f32 %v658_v60, %v552_v17 }
 0x11f   : > { %v848_v15 = vpop.f32.mrf.mxu1  ;;  %v762_v18 = vadd.f32 %v761_v12, %v659_v5 }
 0x120   : > { %v556_v31 = vpop.f32.mrf.mxu2 }
 0x121   : > { %v845_v39 = vadd.f32 %v844_v32, %v762_v18  ;;  %v557_v22 = vadd.f32 %v556_v31, %v1494_v51 }
 0x123   : > { %v769_v19 = vpop.f32.mrf.mxu0  ;;  %887 = vst.msk [vmem:[%s1585_s25 + $0x38] sm:$0xff] %vm879_vm1, %v845_v39  ;;  %v970_v39 = vld [vmem:[%s1585_s25 + $0x10] sm:$0xff] (%p1215_p3) }
 0x124   : > { %v664_v42 = vpop.f32.mrf.mxu3  ;;  %971 = vst [vmem:[%s907_s28 + $0x20] sm:$0xff] (%p1215_p3), %v970_v39 }
 0x125   : > { %v665_v0 = vadd.f32 %v664_v42, %v557_v22  ;;  %v974_v22 = vld [vmem:[%s1585_s25 + $0x20] sm:$0xff] (%p1215_p3)  ;;  %v976_v42 = vld [vmem:[%s1585_s25 + $0x28] sm:$0xff] (%p1215_p3) }
 0x126   : > { %975 = vst [vmem:[%s907_s28 + $0x40] sm:$0xff] (%p1215_p3), %v974_v22 }
 0x127   : > { %v852_v48 = vpop.f32.mrf.mxu1  ;;  %v766_v10 = vadd.f32 %v765_v54, %v665_v0  ;;  %v978_v0 = vld [vmem:[%s1585_s25 + $0x30] sm:$0xff] (%p1215_p3)  ;;  %977 = vst [vmem:[%s907_s28 + $0x50] sm:$0xff] (%p1215_p3), %v976_v42 }
 0x128   : > { %v561_v52 = vpop.f32.mrf.mxu2  ;;  %979 = vst [vmem:[%s907_s28 + $0x60] sm:$0xff] (%p1215_p3), %v978_v0 }
 0x129   : > { %v849_v59 = vadd.f32 %v848_v15, %v766_v10  ;;  %v562_v58 = vadd.f32 %v561_v52, %v1506_v23 }
 0x12b   : > { %v773_v56 = vpop.f32.mrf.mxu0  ;;  %888 = vst.msk [vmem:[%s1585_s25 + $0x40] sm:$0xff] %vm879_vm1, %v849_v59 }
 0x12c   : > { %v670_v4 = vpop.f32.mrf.mxu3 }
 0x12d   : > { %v671_v9 = vadd.f32 %v670_v4, %v562_v58 }
 0x12f   : > { %v856_v62 = vpop.f32.mrf.mxu1  ;;  %v770_v63 = vadd.f32 %v769_v19, %v671_v9  ;;  %v972_v19 = vld [vmem:[%s1585_s25 + $0x18] sm:$0xff] (%p1215_p3) }
 0x130   : > { %v566_v51 = vpop.f32.mrf.mxu2  ;;  %973 = vst [vmem:[%s907_s28 + $0x30] sm:$0xff] (%p1215_p3), %v972_v19 }
 0x131   : > { %v853_v35 = vadd.f32 %v852_v48, %v770_v63  ;;  %v567_v11 = vadd.f32 %v566_v51, %v1518_v30  ;;  %v980_v48 = vld [vmem:[%s1585_s25 + $0x38] sm:$0xff] (%p1215_p3) }
 0x132   : > { %v982_v10 = vld [vmem:[%s1585_s25 + $0x40] sm:$0xff] (%p1215_p3)  ;;  %981 = vst [vmem:[%s907_s28 + $0x70] sm:$0xff] (%p1215_p3), %v980_v48 }
 0x133   : > { %889 = vst.msk [vmem:[%s1585_s25 + $0x48] sm:$0xff] %vm879_vm1, %v853_v35  ;;  %v777_v8 = vpop.f32.mrf.mxu0 }
 0x134   : > { %v676_v6 = vpop.f32.mrf.mxu3  ;;  %983 = vst [vmem:[%s907_s28 + $0x80] sm:$0xff] (%p1215_p3), %v982_v10 }
 0x135   : > { %v677_v43 = vadd.f32 %v676_v6, %v567_v11 }
 0x137   : > { %v860_v57 = vpop.f32.mrf.mxu1  ;;  %v774_v29 = vadd.f32 %v773_v56, %v677_v43 }
 0x138   : > { %v571_v23 = vpop.f32.mrf.mxu2 }
 0x139   : > { %v857_v2 = vadd.f32 %v856_v62, %v774_v29  ;;  %v572_v14 = vadd.f32 %v571_v23, %v1530_v49 }
 0x13a   : > { %v984_v52 = vld [vmem:[%s1585_s25 + $0x48] sm:$0xff] (%p1215_p3) }
 0x13b   : > { %890 = vst.msk [vmem:[%s1585_s25 + $0x50] sm:$0xff] %vm879_vm1, %v857_v2  ;;  %v781_v28 = vpop.f32.mrf.mxu0 }
 0x13c   : > { %v682_v21 = vpop.f32.mrf.mxu3  ;;  %985 = vst [vmem:[%s907_s28 + $0x90] sm:$0xff] (%p1215_p3), %v984_v52 }
 0x13d   : > { %v683_v27 = vadd.f32 %v682_v21, %v572_v14 }
 0x13f   : > { %v778_v33 = vadd.f32 %v777_v8, %v683_v27  ;;  %v864_v36 = vpop.f32.mrf.mxu1 }
 0x140   : > { %v576_v30 = vpop.f32.mrf.mxu2 }
 0x141   : > { %v861_v37 = vadd.f32 %v860_v57, %v778_v33  ;;  %v577_v16 = vadd.f32 %v576_v30, %v1542_v1 }
 0x142   : > { %v986_v59 = vld [vmem:[%s1585_s25 + $0x50] sm:$0xff] (%p1215_p3) }
 0x143   : > { %891 = vst.msk [vmem:[%s1585_s25 + $0x58] sm:$0xff] %vm879_vm1, %v861_v37  ;;  %v785_v49 = vpop.f32.mrf.mxu0 }
 0x144   : > { %v688_v46 = vpop.f32.mrf.mxu3  ;;  %987 = vst [vmem:[%s907_s28 + $0xa0] sm:$0xff] (%p1215_p3), %v986_v59 }
 0x145   : > { %v689_v34 = vadd.f32 %v688_v46, %v577_v16 }
 0x147   : > { %v782_v7 = vadd.f32 %v781_v28, %v689_v34  ;;  %v868_v50 = vpop.f32.mrf.mxu1 }
 0x148   : > { %v581_v38 = vpop.f32.mrf.mxu2 }
 0x149   : > { %v865_v40 = vadd.f32 %v864_v36, %v782_v7  ;;  %v582_v44 = vadd.f32 %v581_v38, %v1554_v26 }
 0x14a   : > { %v988_v56 = vld [vmem:[%s1585_s25 + $0x58] sm:$0xff] (%p1215_p3) }
 0x14b   : > { %892 = vst.msk [vmem:[%s1585_s25 + $0x60] sm:$0xff] %vm879_vm1, %v865_v40  ;;  %v789_v20 = vpop.f32.mrf.mxu0 }
 0x14c   : > { %v694_v45 = vpop.f32.mrf.mxu3  ;;  %989 = vst [vmem:[%s907_s28 + $0xb0] sm:$0xff] (%p1215_p3), %v988_v56 }
 0x14d   : > { %v695_v12 = vadd.f32 %v694_v45, %v582_v44 }
 0x14f   : > { %v786_v24 = vadd.f32 %v785_v49, %v695_v12  ;;  %v872_v3 = vpop.f32.mrf.mxu1 }
 0x150   : > { %v586_v53 = vpop.f32.mrf.mxu2 }
 0x151   : > { %v869_v1 = vadd.f32 %v868_v50, %v786_v24  ;;  %v587_v25 = vadd.f32 %v586_v53, %v1566_v41  ;;  %v966_v41 = vld [vmem:[%s1585_s25] sm:$0xff] (%p1215_p3) }
 0x152   : > { %967 = vst [vmem:[%s907_s28] sm:$0xff] (%p1215_p3), %v966_v41  ;;  %v990_v58 = vld [vmem:[%s1585_s25 + $0x60] sm:$0xff] (%p1215_p3) }
 0x153   : > { %893 = vst.msk [vmem:[%s1585_s25 + $0x68] sm:$0xff] %vm879_vm1, %v869_v1  ;;  %v793_v60 = vpop.f32.mrf.mxu0 }
 0x154   : > { %v700_v32 = vpop.f32.mrf.mxu3  ;;  %991 = vst [vmem:[%s907_s28 + $0xc0] sm:$0xff] (%p1215_p3), %v990_v58 }
 0x155   : > { %v701_v47 = vadd.f32 %v700_v32, %v587_v25 }
 0x157   : > { %v790_v55 = vadd.f32 %v789_v20, %v701_v47  ;;  %v876_v15 = vpop.f32.mrf.mxu1 }
 0x158   : > { %v591_v61 = vpop.f32.mrf.mxu2 }
 0x159   : > { %v873_v26 = vadd.f32 %v872_v3, %v790_v55  ;;  %v592_v54 = vadd.f32 %v591_v61, %v1578_v13  ;;  %v968_v13 = vld [vmem:[%s1585_s25 + $0x8] sm:$0xff] (%p1215_p3) }
 0x15a   : > { %969 = vst [vmem:[%s907_s28 + $0x10] sm:$0xff] (%p1215_p3), %v968_v13  ;;  %v992_v4 = vld [vmem:[%s1585_s25 + $0x68] sm:$0xff] (%p1215_p3) }
 0x15b   : > { %894 = vst.msk [vmem:[%s1585_s25 + $0x70] sm:$0xff] %vm879_vm1, %v873_v26 }
 0x15c   : > { %v706_v17 = vpop.f32.mrf.mxu3  ;;  %993 = vst [vmem:[%s907_s28 + $0xd0] sm:$0xff] (%p1215_p3), %v992_v4 }
 0x15d   : > { %v707_v5 = vadd.f32 %v706_v17, %v592_v54 }
 0x15f   : > { %v794_v18 = vadd.f32 %v793_v60, %v707_v5  ;;  %902 = sbr.rel (!%p1215_p3) target bundleno = 364 (0x16c), region = 36 }
 0x161   : > { %v877_v31 = vadd.f32 %v876_v15, %v794_v18 }
 0x162   : > { %v994_v9 = vld [vmem:[%s1585_s25 + $0x70] sm:$0xff] (%p1215_p3) }
 0x163   : > { %895 = vst.msk [vmem:[%s1585_s25 + $0x78] sm:$0xff] %vm879_vm1, %v877_v31 }
 0x164   : > { %995 = vst [vmem:[%s907_s28 + $0xe0] sm:$0xff] %v994_v9 }
 0x16a   : > { %v996_v62 = vld [vmem:[%s1585_s25 + $0x78] sm:$0xff] }
 0x16b   : > { %997 = vst [vmem:[%s907_s28 + $0xf0] sm:$0xff] %v996_v62 }
 0x16c PF: > { %s13_s16 = sadd.s32 1, %s1161_s16   ;;  %s1687_s12 = smov %s1149_s13 }
 0x16d   : > { %p10_p8 = scmp.ge.s32.totalorder %s13_s16, 4   ;;  %s1688_s13 = smov %s1224_s22 }
 0x16e   : > { %s1689_s14 = smov %s1157_s15  ;;  %s1690_s15 = smov %s1692_s18 }
 0x16f   :  { %12 = sbr.rel (!%p10_p8) target bundleno = 3 (0x3), region = 101 }

</bundles_post_ra>
